<compile_context>
chip_gen: v7x
topology: tpu7x:2x2x1
jax: 0.10.0
libtpu: 0.0.40
codegen_flags: <defaults>
</compile_context>

<pallas_src>
import functools

import jax
import jax.numpy as jnp
from jax.experimental import pallas as pl
from jax.experimental.pallas import tpu as pltpu


def _sdpa_kernel(q_ref, k_ref, v_ref, mask_ref, ctx_ref, prob_ref, *, inv_scale):
    # Leading (batch*head) block dim is squeezed away -> 2-D refs.
    q = q_ref[...] * inv_scale   # (TQ, D)  scale folded into Q (cheaper than scaling scores)
    k = k_ref[...]               # (S,  D)  resident across query tiles
    v = v_ref[...]               # (S,  D)  resident across query tiles
    m = mask_ref[...]            # (TQ, S)  int8, nonzero => masked out

    # scores = (Q / sqrt(d)) @ K^T  -> MXU, contraction on last dims of both operands
    scores = jax.lax.dot_general(
        q, k, (((1,), (1,)), ((), ())),
        preferred_element_type=jnp.float32,
    )

    # masked_fill_(mask, -1e9)
    scores = jnp.where(m != 0, jnp.float32(-1e9), scores)

    # numerically-stable softmax along the last axis (kept in f32)
    row_max = jnp.max(scores, axis=-1, keepdims=True)
    exp_scores = jnp.exp(scores - row_max)
    denom = jnp.sum(exp_scores, axis=-1, keepdims=True)
    # exact reciprocal: attn_prob is a returned output and must match softmax
    prob = exp_scores * pl.reciprocal(denom)

    # context = P @ V -> MXU (P cast to V's dtype; f32 accumulation)
    ctx = jnp.dot(prob.astype(v.dtype), v, preferred_element_type=jnp.float32)

    prob_ref[...] = prob.astype(prob_ref.dtype)
    ctx_ref[...] = ctx.astype(ctx_ref.dtype)


def _pick_q_tile(S, D, itemsize, vmem_budget=40 * 1024 * 1024):
    """Largest query tile (multiple of 8, divides S) whose double-buffered
    footprint (resident K/V + q/mask/ctx/prob blocks) fits the VMEM budget."""
    def fits(tq):
        kv = 2 * S * D * itemsize                       # K + V resident blocks
        per_q = tq * (2 * D * itemsize + S * (1 + 4))   # q + ctx + mask(i8) + prob(f32)
        return 2 * (kv + per_q) <= vmem_budget          # x2 double-buffering

    candidates = [t for t in (512, 256, 128, 64, 32, 16, 8) if S % t == 0]
    for t in candidates:
        if fits(t):
            return t
    if candidates:
        return candidates[-1]   # nothing "fits": fall back to smallest legal tile
    return S                    # small / odd S: single full-extent block (always legal)


def scaled_dot_product_attention(query, key, value, attention_mask, head_dim):
    """Pallas implementation of ScaledDotProductAttention.forward (dropout_rate=0).

    query/key/value: (B, H, S, D); attention_mask: (B, H, S, S), truthy => masked.
    Returns (context.squeeze(), attn_prob) like the PyTorch module.
    """
    B, H, S, D = query.shape
    assert key.shape == (B, H, S, D) and value.shape == (B, H, S, D)
    assert attention_mask.shape == (B, H, S, S)

    inv_scale = 1.0 / float(head_dim) ** 0.5
    itemsize = jnp.dtype(query.dtype).itemsize
    TQ = _pick_q_tile(S, D, itemsize)
    BH = B * H
    nq = S // TQ

    # Flatten (B, H) -> one grid axis; mask travels as 1-byte int8 (no f32 cast).
    q_f = query.reshape(BH, S, D)
    k_f = key.reshape(BH, S, D)
    v_f = value.reshape(BH, S, D)
    m_i8 = attention_mask.reshape(BH, S, S).astype(jnp.int8)

    kernel = functools.partial(_sdpa_kernel, inv_scale=inv_scale)

    q_spec = pl.BlockSpec((None, TQ, D), lambda bh, qi: (bh, qi, 0))
    kv_spec = pl.BlockSpec((None, S, D), lambda bh, qi: (bh, 0, 0))   # resident over qi
    mask_spec = pl.BlockSpec((None, TQ, S), lambda bh, qi: (bh, qi, 0))
    ctx_spec = pl.BlockSpec((None, TQ, D), lambda bh, qi: (bh, qi, 0))
    prob_spec = pl.BlockSpec((None, TQ, S), lambda bh, qi: (bh, qi, 0))

    context, attn_prob = pl.pallas_call(
        kernel,
        out_shape=(
            jax.ShapeDtypeStruct((BH, S, D), query.dtype),
            jax.ShapeDtypeStruct((BH, S, S), jnp.float32),
        ),
        grid_spec=pltpu.PrefetchScalarGridSpec(
            num_scalar_prefetch=0,
            grid=(BH, nq),
            in_specs=[q_spec, kv_spec, kv_spec, mask_spec],
            out_specs=[ctx_spec, prob_spec],
        ),
        compiler_params=pltpu.CompilerParams(
            # no output block is revisited -> both axes parallel (v7x 2-TC sharding)
            dimension_semantics=("parallel", "parallel"),
            vmem_limit_bytes=48 * 1024 * 1024,
        ),
    )(q_f, k_f, v_f, m_i8)

    context = context.reshape(B, H, S, D)
    attn_prob = attn_prob.reshape(B, H, S, S)

    # PyTorch does torch.matmul(attn_prob, value).squeeze()
    context = jnp.squeeze(context)
    return context, attn_prob


def _reference(query, key, value, attention_mask, head_dim):
    scale = float(head_dim) ** 0.5
    scores = jnp.einsum("bhqd,bhkd->bhqk", query, key) / scale
    scores = jnp.where(attention_mask, -1e9, scores)
    prob = jax.nn.softmax(scores, axis=-1)
    ctx = jnp.einsum("bhqk,bhkd->bhqd", prob, value)
    return jnp.squeeze(ctx), prob


if __name__ == "__main__":
    bs, n_heads, max_seq, d_hidden = 2, 4, 8, 32
    head_dim = d_hidden

    key_rng = jax.random.PRNGKey(0)
    kq, kk, kv, km = jax.random.split(key_rng, 4)

    query = jax.random.normal(kq, (bs, n_heads, max_seq, d_hidden), dtype=jnp.float32)
    key = jax.random.normal(kk, (bs, n_heads, max_seq, d_hidden), dtype=jnp.float32)
    value = jax.random.normal(kv, (bs, n_heads, max_seq, d_hidden), dtype=jnp.float32)
    # boolean mask: True => masked out (like torch masked_fill_). Keep diag unmasked.
    attention_mask = jax.random.bernoulli(km, p=0.3, shape=(bs, n_heads, max_seq, max_seq))
    eye = jnp.eye(max_seq, dtype=jnp.bool_)[None, None]
    attention_mask = jnp.logical_and(attention_mask, jnp.logical_not(eye))

    context, attn_prob = scaled_dot_product_attention(
        query, key, value, attention_mask, head_dim
    )
    context = jax.block_until_ready(context)
    attn_prob = jax.block_until_ready(attn_prob)

    ref_ctx, ref_prob = _reference(query, key, value, attention_mask, head_dim)
    assert jnp.allclose(context, ref_ctx, atol=1e-4, rtol=1e-4)
    assert jnp.allclose(attn_prob, ref_prob, atol=1e-4, rtol=1e-4)

    print("KERNEL_OK")
</pallas_src>

<mosaic_0001>
module attributes {stable_mosaic.version = 11 : i64} {
  func.func @_sdpa_kernel(%arg0: i32, %arg1: i32, %arg2: memref<1x8x32xf32, #tpu.memory_space<vmem>>, %arg3: memref<1x8x32xf32, #tpu.memory_space<vmem>>, %arg4: memref<1x8x32xf32, #tpu.memory_space<vmem>>, %arg5: memref<1x8x8xi8, #tpu.memory_space<vmem>>, %arg6: memref<1x8x32xf32, #tpu.memory_space<vmem>>, %arg7: memref<1x8x8xf32, #tpu.memory_space<vmem>>) attributes {dimension_semantics = [#tpu.dimension_semantics<parallel>, #tpu.dimension_semantics<parallel>], iteration_bounds = array<i64: 8, 1>, scalar_prefetch = 0 : i64, scratch_operands = 0 : i64, tpu.core_type = #tpu.core_type<tc>, window_params = [{transform_indices = @transform_0, window_bounds = array<i64: 1, 8, 32>}, {transform_indices = @transform_1, window_bounds = array<i64: 1, 8, 32>}, {transform_indices = @transform_2, window_bounds = array<i64: 1, 8, 32>}, {transform_indices = @transform_3, window_bounds = array<i64: 1, 8, 8>}, {transform_indices = @transform_4, window_bounds = array<i64: 1, 8, 32>}, {transform_indices = @transform_5, window_bounds = array<i64: 1, 8, 8>}]} {
    %c0 = arith.constant 0 : index
    %c0_0 = arith.constant 0 : index
    %c0_1 = arith.constant 0 : index
    %0 = vector.load %arg2[%c0, %c0_0, %c0_1] : memref<1x8x32xf32, #tpu.memory_space<vmem>>, vector<1x8x32xf32>
    %1 = vector.shape_cast %0 : vector<1x8x32xf32> to vector<8x32xf32>
    %cst = arith.constant 0.176776692 : f32
    %2 = vector.broadcast %cst : f32 to vector<8x32xf32>
    %3 = arith.mulf %1, %2 : vector<8x32xf32>
    %c0_2 = arith.constant 0 : index
    %c0_3 = arith.constant 0 : index
    %c0_4 = arith.constant 0 : index
    %4 = vector.load %arg3[%c0_2, %c0_3, %c0_4] : memref<1x8x32xf32, #tpu.memory_space<vmem>>, vector<1x8x32xf32>
    %5 = vector.shape_cast %4 : vector<1x8x32xf32> to vector<8x32xf32>
    %c0_5 = arith.constant 0 : index
    %c0_6 = arith.constant 0 : index
    %c0_7 = arith.constant 0 : index
    %6 = vector.load %arg4[%c0_5, %c0_6, %c0_7] : memref<1x8x32xf32, #tpu.memory_space<vmem>>, vector<1x8x32xf32>
    %7 = vector.shape_cast %6 : vector<1x8x32xf32> to vector<8x32xf32>
    %c0_8 = arith.constant 0 : index
    %c0_9 = arith.constant 0 : index
    %c0_10 = arith.constant 0 : index
    %8 = vector.load %arg5[%c0_8, %c0_9, %c0_10] : memref<1x8x8xi8, #tpu.memory_space<vmem>>, vector<1x8x8xi8>
    %9 = vector.shape_cast %8 : vector<1x8x8xi8> to vector<8x8xi8>
    %cst_11 = arith.constant dense<0.000000e+00> : vector<8x8xf32>
    %10 = tpu.matmul %3, %5, %cst_11 {dimension_numbers = #tpu.dot_dimension_numbers<[1], [1], [0], [0], [0, 0, 1, 0], [], []>} : vector<8x32xf32>, vector<8x32xf32>, vector<8x8xf32> -> vector<8x8xf32>
    %c0_i8 = arith.constant 0 : i8
    %11 = vector.broadcast %c0_i8 : i8 to vector<8x8xi8>
    %12 = arith.cmpi ne, %9, %11 : vector<8x8xi8>
    %cst_12 = arith.constant -1.000000e+09 : f32
    %13 = vector.broadcast %cst_12 : f32 to vector<8x8xf32>
    %14 = arith.select %12, %13, %10 : vector<8x8xi1>, vector<8x8xf32>
    %cst_13 = arith.constant dense<0xFF800000> : vector<8xf32>
    %15 = vector.multi_reduction <maximumf>, %14, %cst_13 [1] : vector<8x8xf32> to vector<8xf32>
    %16 = vector.shape_cast %15 : vector<8xf32> to vector<8x1xf32>
    %17 = vector.broadcast %16 : vector<8x1xf32> to vector<8x8xf32>
    %18 = arith.subf %14, %17 : vector<8x8xf32>
    %19 = math.exp %18 : vector<8x8xf32>
    %cst_14 = arith.constant dense<0.000000e+00> : vector<8xf32>
    %20 = vector.multi_reduction <add>, %19, %cst_14 [1] : vector<8x8xf32> to vector<8xf32>
    %21 = vector.shape_cast %20 : vector<8xf32> to vector<8x1xf32>
    %22 = tpu.reciprocal %21 : vector<8x1xf32> -> vector<8x1xf32>
    %23 = vector.broadcast %22 : vector<8x1xf32> to vector<8x8xf32>
    %24 = arith.mulf %19, %23 : vector<8x8xf32>
    %cst_15 = arith.constant dense<0.000000e+00> : vector<8x32xf32>
    %25 = tpu.matmul %24, %7, %cst_15 {dimension_numbers = #tpu.dot_dimension_numbers<[1], [0], [0], [1], [0, 0, 1, 1], [], []>} : vector<8x8xf32>, vector<8x32xf32>, vector<8x32xf32> -> vector<8x32xf32>
    %c0_16 = arith.constant 0 : index
    %c0_17 = arith.constant 0 : index
    %c0_18 = arith.constant 0 : index
    %26 = vector.load %arg7[%c0_16, %c0_17, %c0_18] : memref<1x8x8xf32, #tpu.memory_space<vmem>>, vector<1x8x8xf32>
    %27 = vector.shape_cast %26 : vector<1x8x8xf32> to vector<8x8xf32>
    %28 = vector.shape_cast %24 : vector<8x8xf32> to vector<1x8x8xf32>
    tpu.vector_store %arg7[%c0_16, %c0_17, %c0_18], %28 {strides = array<i32>} : memref<1x8x8xf32, #tpu.memory_space<vmem>>, vector<1x8x8xf32>,
    %c0_19 = arith.constant 0 : index
    %c0_20 = arith.constant 0 : index
    %c0_21 = arith.constant 0 : index
    %29 = vector.load %arg6[%c0_19, %c0_20, %c0_21] : memref<1x8x32xf32, #tpu.memory_space<vmem>>, vector<1x8x32xf32>
    %30 = vector.shape_cast %29 : vector<1x8x32xf32> to vector<8x32xf32>
    %31 = vector.shape_cast %25 : vector<8x32xf32> to vector<1x8x32xf32>
    tpu.vector_store %arg6[%c0_19, %c0_20, %c0_21], %31 {strides = array<i32>} : memref<1x8x32xf32, #tpu.memory_space<vmem>>, vector<1x8x32xf32>,
    return
  }
  func.func @transform_0(%arg0: i32, %arg1: i32) -> (i32, i32, i32) {
    %c0_i32 = arith.constant 0 : i32
    %c0_i32_0 = arith.constant 0 : i32
    return %arg0, %arg1, %c0_i32 : i32, i32, i32
  }
  func.func @transform_1(%arg0: i32, %arg1: i32) -> (i32, i32, i32) {
    %c0_i32 = arith.constant 0 : i32
    %c0_i32_0 = arith.constant 0 : i32
    %c0_i32_1 = arith.constant 0 : i32
    return %arg0, %c0_i32, %c0_i32_0 : i32, i32, i32
  }
  func.func @transform_2(%arg0: i32, %arg1: i32) -> (i32, i32, i32) {
    %c0_i32 = arith.constant 0 : i32
    %c0_i32_0 = arith.constant 0 : i32
    %c0_i32_1 = arith.constant 0 : i32
    return %arg0, %c0_i32, %c0_i32_0 : i32, i32, i32
  }
  func.func @transform_3(%arg0: i32, %arg1: i32) -> (i32, i32, i32) {
    %c0_i32 = arith.constant 0 : i32
    %c0_i32_0 = arith.constant 0 : i32
    return %arg0, %arg1, %c0_i32 : i32, i32, i32
  }
  func.func @transform_4(%arg0: i32, %arg1: i32) -> (i32, i32, i32) {
    %c0_i32 = arith.constant 0 : i32
    %c0_i32_0 = arith.constant 0 : i32
    return %arg0, %arg1, %c0_i32 : i32, i32, i32
  }
  func.func @transform_5(%arg0: i32, %arg1: i32) -> (i32, i32, i32) {
    %c0_i32 = arith.constant 0 : i32
    %c0_i32_0 = arith.constant 0 : i32
    return %arg0, %arg1, %c0_i32 : i32, i32, i32
  }
}

</mosaic_0001>

<bundles_post_ra>
// kernel: tpu_custom_call.1
= control target key start
LH: loop header
LB: loop body
LE: loop exit
PB: predicated region body
PF: predicated region fallthrough
CT: control target
= control target key end

     0   :  { %s1517_s0 = inlined_call_operand.hbm [shape: f32[8,8,32], index: 0, kind: input, shape index: {}]   ;;  %s1518_s1 = inlined_call_operand.hbm [shape: f32[8,8,32], index: 1, kind: input, shape index: {}]   ;;  %s1519_s2 = inlined_call_operand.hbm [shape: f32[8,8,32], index: 2, kind: input, shape index: {}]   ;;  %s1520_s3 = inlined_call_operand.hbm [shape: s8[8,8,8], index: 3, kind: input, shape index: {}]   ;;  %s1521_s4 = inlined_call_operand.hbm [shape: f32[8,8,32], index: 4, kind: output, shape index: {0}]   ;;  %s1522_s5 = inlined_call_operand.hbm [shape: f32[8,8,8], index: 5, kind: output, shape index: {1}]  }
   0x1   :  { %1533 = sst [smem:[#allocation24_spill]] %s1518_s1 }
   0x2   :  { %11 = vsyncpa [#allocation3], 0 }
   0x3   :  { %13 = vsyncpa [#allocation3 + $0x1], 0 }
   0x4   :  { %14 = vsyncpa [#allocation6], 0 }
   0x5   :  { %16 = vsyncpa [#allocation6 + $0x1], 0 }
   0x6   :  { %17 = vsyncpa [#allocation9], 0 }
   0x7   :  { %19 = vsyncpa [#allocation9 + $0x1], 0 }
   0x8   :  { %20 = vsyncpa [#allocation4], 0 }
   0x9   :  { %22 = vsyncpa [#allocation4 + $0x1], 0 }
   0xa   :  { %23 = vsyncpa [#allocation12], 0 }
   0xb   :  { %25 = vsyncpa [#allocation12 + $0x1], 0  ;;  %s1185_s18 = smov 0   ;;  %s1187_s19 = smov 0  }
   0xc   :  { %s1189_s20 = smov 0   ;;  %s1191_s21 = smov 0  }
   0xd   :  { %s1193_s22 = smov 0   ;;  %s1195_s23 = smov 0  }
   0xe LB: > { %1534 = sst [smem:[#allocation18_spill]] %s1124_s18  ;;  %s1216_s24 = sadd.s32 4294967295, %s1144_s23   ;;  %s1144_s23 = sphi %s1195_s23, %s31_s23   ;;  %s1140_s22 = sphi %s1193_s22, %s1565_s22   ;;  %s1136_s21 = sphi %s1191_s21, %s1564_s21   ;;  %s1132_s20 = sphi %s1189_s20, %s1560_s20   ;;  %s1128_s19 = sphi %s1187_s19, %s1563_s19   ;;  %s1124_s18 = sphi %s1185_s18, %s1562_s18  }
   0xf   : > { %1535 = sst [smem:[#allocation19_spill]] %s1132_s20  ;;  %s772_s25 = sadd.s32 4294967294, %s1144_s23  }
  0x10   : > { %1536 = sst [smem:[#allocation20_spill]] %s1144_s23  ;;  %s43_s26 = sadd.s32 1, %s1140_s22 }
  0x11   : > { %s52_s27 = sadd.s32 1, %s1132_s20  ;;  %p45_p0 = scmp.ge.s32.totalorder %s43_s26, 8 }
  0x12   : > { %p59_p1 = scmp.ne.s32.totalorder %s1132_s20, %s1128_s19  ;;  %p60_p2 = scmp.eq.s32.totalorder %s1144_s23, 0 }
  0x13   : > { %p65_p3 = scmp.ne.s32.totalorder %s1128_s19, %s1124_s18  ;;  %s1567_s26 = smov (%p45_p0, %s43_s26), 0 }
  0x14   : > { %1537 = sst [smem:[#allocation21_spill]] %s1567_s26  ;;  %p1228_p4 = por %p60_p2, %p59_p1 }
  0x15   : > { %p66_p5 = scmp.eq.s32.totalorder %s1216_s24, 0  ;;  %s47_s29 = ssub.s32 %s1140_s22, %s1567_s26 }
  0x16   : > { %p171_p6 = scmp.eq.s32.totalorder %s1216_s24, 7  ;;  %p50_p7 = scmp.eq.s32.totalorder %s47_s29, 0 }
  0x17   : > { %p1236_p8 = por %p66_p5, %p65_p3  ;;  %p177_p10 = scmp.eq.s32.totalorder %s772_s25, 7 }
  0x18   : > { %p1240_p9 = por %p171_p6, %p59_p1  ;;  %p845_p12 = scmp.lt.s32.totalorder %s1144_s23, 8 }
  0x19   : > { %s1539_s30 = scalar_select %p1236_p8, 1, 0 }
  0x1a   : > { %s1540_s6 = scalar_select %p1240_p9, 1, 0 }
  0x1b   : > { %s1245_s7 = scalar_select %p50_p7, %s1132_s20, %s52_s27  }
  0x1c   : > { %p1247_p11 = por %p177_p10, %p65_p3  ;;  %s1253_s9 = sand.u32 1, %s1132_s20  }
  0x1d   : > { %1541 = sst [smem:[#allocation22_spill]] %s1245_s7  ;;  %s1256_s10 = sshll.u32 %s1253_s9, 3 }
  0x1e   : > { %s1542_s8 = scalar_select %p1247_p11, 1, 0 }
  0x1f   : > { %s1259_s11 = sshll.u32 %s1140_s22, 7  ;;  %p1263_p13 = pnand %p845_p12, %p1228_p4 }
  0x20   : > { %1543 = sst [smem:[#allocation23_spill]] %s1542_s8  ;;  %s244_s13 = sand.u32 1, %s1144_s23  }
  0x21   : > { %s1544_s12 = scalar_select %p1263_p13, 1, 0 }
  0x22   : > { %s1545_s1 = sld [smem:[#allocation24_spill]]  ;;  %s248_s17 = scalar_lea.vmem [#allocation5], %s1256_s10 }
  0x23   : > { %s255_s25 = sshll.u32 %s248_s17, 4  ;;  %s1279_s27 = scalar_lea.sflag [#allocation6], %s244_s13  ;;  %s1276_s25 = int_to_ptr.vmem [resolvable:$true] %s255_s25 }
  0x24   : > { %p1285_p3 = pneg %p1263_p13 }
  0x28   : > { %s1272_s16 = scalar_lea.hbm %s1545_s1, %s1259_s11  ;;  %s907_s17 = scalar_lea.hbm %s1545_s1, 1024 }
  0x29   : > { %s902_s28 = scalar_lea.hbm %s1272_s16, 128  ;;  %p908_p6 = scmp.lt.u32.totalorder %s1272_s16, %s1545_s1 }
  0x2a   : > { %p903_p2 = scmp.ne.s32.totalorder %s1272_s16, %s902_s28  ;;  %p909_p7 = scmp.lt.u32.totalorder %s907_s17, %s902_s28 }
  0x2b   : > { %p911_p12 = scmp.lt.u32.totalorder %s902_s28, %s1272_s16 }
  0x2c   : > { %p905_p4 = pnand %p1285_p3, %p903_p2  ;;  %p910_p10 = por %p909_p7, %p908_p6 }
  0x2e   : > { %p906_p5 = pneg %p905_p4  ;;  %p912_p0 = por %p911_p12, %p910_p10 }
  0x30   : > { %p913_p1 = pnand %p912_p0, %p906_p5 }
  0x32   : > { %916 = shalt.err (!%p913_p1)
}
  0x33   : > { %s917_s13 = scalar_lea.vmem %s1276_s25, 128  ;;  %s1146_s14 = smov [#allocation5]  }
  0x34   : > { %p918_p2 = scmp.ne.s32.totalorder %s1276_s25, %s917_s13  ;;  %s922_s15 = sshll.u32 %s1146_s14, 4  ;;  %s923_s15 = int_to_ptr.vmem [resolvable:$false] %s922_s15 }
  0x35   : > { %s924_s26 = scalar_lea.vmem %s923_s15, 256  ;;  %p925_p9 = scmp.lt.s32.totalorder %s1276_s25, %s923_s15 }
  0x36   : > { %p920_p4 = pnand %p918_p2, %p1285_p3  ;;  %p926_p8 = scmp.lt.s32.totalorder %s924_s26, %s917_s13 }
  0x38   : > { %p921_p11 = pneg %p920_p4  ;;  %p927_p6 = por %p926_p8, %p925_p9 }
  0x3a   : > { %p928_p7 = pnand %p927_p6, %p921_p11 }
  0x3c   : > { %931 = shalt.err (!%p928_p7)
}
  0x3d   : > { %831 = dma.hbm_to_vmem [thread:$0]  (!%p1263_p13), %s1272_s16, 128, %s1276_s25, %s1279_s27  }
  0x3e   : > { %p1547_p0 = scmp.lt.s32.totalorder %s1144_s23, 9  ;;  %p1548_p1 = scmp.ge.s32.totalorder %s1144_s23, 1 }
  0x3f   : > { %s1321_s13 = scalar_lea.hbm %s1517_s0, %s1259_s11  ;;  %s229_s14 = scalar_lea.vmem [#allocation2], %s1256_s10 }
  0x40   : > { %p1313_p5 = pnand %p1548_p1, %p1547_p0  ;;  %s237_s15 = sshll.u32 %s229_s14, 4  ;;  %s1324_s15 = int_to_ptr.vmem [resolvable:$true] %s237_s15 }
  0x41   : > { %s1330_s26 = scalar_lea.hbm %s1519_s2, %s1259_s11  ;;  %s226_s1 = scalar_lea.sflag [#allocation3], %s1253_s9 }
  0x42   : > { %s1549_s7 = scalar_select %p1313_p5, 1, 0 }
  0x43   : > { %s932_s20 = scalar_lea.hbm %s1321_s13, 128  ;;  %s937_s8 = scalar_lea.hbm %s1517_s0, 1024 }
  0x44   : > { %p933_p8 = scmp.ne.s32.totalorder %s1321_s13, %s932_s20  ;;  %p938_p10 = scmp.lt.u32.totalorder %s1321_s13, %s1517_s0 }
  0x45   : > { %p939_p12 = scmp.lt.u32.totalorder %s937_s8, %s932_s20  ;;  %p941_p4 = scmp.lt.u32.totalorder %s932_s20, %s1321_s13 }
  0x46   : > { %p935_p9 = pnand %p933_p8, %p1285_p3 }
  0x47   : > { %p940_p2 = por %p939_p12, %p938_p10 }
  0x48   : > { %p936_p11 = pneg %p935_p9 }
  0x49   : > { %p942_p6 = por %p941_p4, %p940_p2 }
  0x4b   : > { %p943_p7 = pnand %p942_p6, %p936_p11 }
  0x4d   : > { %946 = shalt.err (!%p943_p7)
}
  0x4e   : > { %s947_s11 = scalar_lea.vmem %s1324_s15, 128  ;;  %s1147_s14 = smov [#allocation2]  }
  0x4f   : > { %p948_p0 = scmp.ne.s32.totalorder %s1324_s15, %s947_s11  ;;  %s952_s16 = sshll.u32 %s1147_s14, 4  ;;  %s953_s16 = int_to_ptr.vmem [resolvable:$false] %s952_s16 }
  0x50   : > { %s954_s18 = scalar_lea.vmem %s953_s16, 256  ;;  %p955_p9 = scmp.lt.s32.totalorder %s1324_s15, %s953_s16 }
  0x51   : > { %p950_p1 = pnand %p948_p0, %p1285_p3  ;;  %p956_p5 = scmp.lt.s32.totalorder %s954_s18, %s947_s11 }
  0x53   : > { %p951_p8 = pneg %p950_p1  ;;  %p957_p10 = por %p956_p5, %p955_p9 }
  0x55   : > { %p958_p12 = pnand %p957_p10, %p951_p8 }
  0x57   : > { %961 = shalt.err (!%p958_p12)
}
  0x58   : > { %828 = dma.hbm_to_vmem [thread:$0]  (!%p1263_p13), %s1321_s13, 128, %s1324_s15, %s226_s1  }
  0x59   : > { %s266_s20 = scalar_lea.vmem [#allocation7], %s1256_s10  ;;  %s781_s8 = sshll.u32 %s1253_s9, 1 }
  0x5a   : > { %s273_s23 = sshll.u32 %s266_s20, 4  ;;  %s962_s25 = scalar_lea.hbm %s1330_s26, 128  ;;  %s274_s23 = int_to_ptr.vmem [resolvable:$true] %s273_s23 }
  0x5b   : > { %p963_p5 = scmp.ne.s32.totalorder %s1330_s26, %s962_s25  ;;  %s967_s11 = scalar_lea.hbm %s1519_s2, 1024 }
  0x5c   : > { %p968_p4 = scmp.lt.u32.totalorder %s1330_s26, %s1519_s2  ;;  %p969_p6 = scmp.lt.u32.totalorder %s967_s11, %s962_s25 }
  0x5d   : > { %p965_p11 = pnand %p963_p5, %p1285_p3  ;;  %p971_p0 = scmp.lt.u32.totalorder %s962_s25, %s1330_s26 }
  0x5e   : > { %p970_p7 = por %p969_p6, %p968_p4 }
  0x5f   : > { %p966_p2 = pneg %p965_p11 }
  0x60   : > { %p972_p1 = por %p971_p0, %p970_p7 }
  0x62   : > { %p973_p8 = pnand %p972_p1, %p966_p2 }
  0x64   : > { %976 = shalt.err (!%p973_p8)
}
  0x65   : > { %s977_s1 = scalar_lea.vmem %s274_s23, 128  ;;  %s1148_s10 = smov [#allocation7]  }
  0x66   : > { %p978_p9 = scmp.ne.s32.totalorder %s274_s23, %s977_s1  ;;  %s982_s13 = sshll.u32 %s1148_s10, 4  ;;  %s983_s13 = int_to_ptr.vmem [resolvable:$false] %s982_s13 }
  0x67   : > { %s984_s15 = scalar_lea.vmem %s983_s13, 256  ;;  %p985_p5 = scmp.lt.s32.totalorder %s274_s23, %s983_s13 }
  0x68   : > { %p980_p10 = pnand %p978_p9, %p1285_p3  ;;  %p986_p11 = scmp.lt.s32.totalorder %s984_s15, %s977_s1 }
  0x6a   : > { %p981_p12 = pneg %p980_p10  ;;  %p987_p13 = por %p986_p11, %p985_p5 }
  0x6c   : > { %p988_p4 = pnand %p987_p13, %p981_p12 }
  0x6e   : > { %991 = shalt.err (!%p988_p4)
}
  0x6f   : > { %p1550_p6 = scmp.ne.s32.totalorder %s1544_s12, 0  ;;  %s782_s18 = sshll.u32 %s1140_s22, 5 }
  0x70   : > { %s1378_s28 = scalar_lea.hbm %s1520_s3, %s782_s18  ;;  %s284_s17 = scalar_lea.vmem [#allocation8], %s781_s8 }
  0x71   : > { %834 = dma.hbm_to_vmem [thread:$0]  (!%p1550_p6), %s1330_s26, 128, %s274_s23, %s1279_s27  }
  0x72   : > { %s292_s11 = sshll.u32 %s284_s17, 4  ;;  %s281_s14 = scalar_lea.sflag [#allocation9], %s1253_s9  ;;  %s293_s11 = int_to_ptr.vmem [resolvable:$true] %s292_s11 }
  0x73   : > { %s992_s16 = scalar_lea.hbm %s1378_s28, 32  ;;  %s997_s23 = scalar_lea.hbm %s1520_s3, 256 }
  0x74   : > { %p993_p13 = scmp.ne.s32.totalorder %s1378_s28, %s992_s16  ;;  %p998_p0 = scmp.lt.u32.totalorder %s1378_s28, %s1520_s3 }
  0x75   : > { %p999_p1 = scmp.lt.u32.totalorder %s997_s23, %s992_s16  ;;  %p1001_p9 = scmp.lt.u32.totalorder %s992_s16, %s1378_s28 }
  0x76   : > { %p995_p2 = pnand %p993_p13, %p1285_p3 }
  0x77   : > { %p1000_p8 = por %p999_p1, %p998_p0 }
  0x78   : > { %p996_p7 = pneg %p995_p2 }
  0x79   : > { %p1002_p10 = por %p1001_p9, %p1000_p8 }
  0x7b   : > { %p1003_p12 = pnand %p1002_p10, %p996_p7 }
  0x7d   : > { %1006 = shalt.err (!%p1003_p12)
}
  0x7e   : > { %s1007_s9 = scalar_lea.vmem %s293_s11, 32  ;;  %s1149_s8 = smov [#allocation8]  }
  0x7f   : > { %p1008_p5 = scmp.ne.s32.totalorder %s293_s11, %s1007_s9  ;;  %s1012_s13 = sshll.u32 %s1149_s8, 4  ;;  %s1013_s13 = int_to_ptr.vmem [resolvable:$false] %s1012_s13 }
  0x80   : > { %s1014_s15 = scalar_lea.vmem %s1013_s13, 64  ;;  %p1015_p13 = scmp.lt.s32.totalorder %s293_s11, %s1013_s13 }
  0x81   : > { %p1010_p11 = pnand %p1008_p5, %p1285_p3  ;;  %p1016_p2 = scmp.lt.s32.totalorder %s1014_s15, %s1007_s9 }
  0x83   : > { %p1011_p4 = pneg %p1010_p11  ;;  %p1017_p6 = por %p1016_p2, %p1015_p13 }
  0x85   : > { %p1018_p0 = pnand %p1017_p6, %p1011_p4 }
  0x87   : > { %1021 = shalt.err (!%p1018_p0)
}
  0x88   : > { %p1551_p1 = scmp.ne.s32.totalorder %s1544_s12, 0  ;;  %p1552_p7 = scmp.ne.s32.totalorder %s1549_s7, 0 }
  0x89   : > { %s1403_s29 = sand.u32 (!%p1552_p7), 1, %s1128_s19   ;;  %p1553_p3 = scmp.ne.s32.totalorder (!%p1552_p7), %s1539_s30, 0 }
  0x8a   : > { %837 = dma.hbm_to_vmem [thread:$0]  (!%p1551_p1), %s1378_s28, 32, %s293_s11, %s281_s14  }
  0x8b   : > { %301 = sbr.rel (%p1552_p7) target bundleno = 912 (0x390), region = 36  ;;  %s1406_s18 = sshll.u32 (!%p1552_p7), %s1403_s29, 3 }
  0x8c   : > { %s304_s20 = scalar_lea.sflag (!%p1552_p7), [#allocation3], %s1403_s29  ;;  %s307_s25 = scalar_lea.vmem (!%p1552_p7), [#allocation2], %s1406_s18 }
  0x92   : > { %1103 = dma.done.wait (%p1553_p3), %s304_s20, 128  }
  0x93   : > { %1105 = vsyncadd (%p1553_p3), %s304_s20, 4294967168  ;;  %s312_s12 = sand.u32 1, %s1216_s24   ;;  %s316_s28 = scalar_lea.vmem [#allocation5], %s1406_s18 }
  0x94   : > { %s313_s7 = scalar_lea.sflag [#allocation6], %s312_s12 }
  0x95   : > { %1107 = dma.done.wait (%p1553_p3), %s313_s7, 256  }
  0x96   : > { %1109 = vsyncadd (%p1553_p3), %s313_s7, 4294967040  ;;  %s787_s17 = sshll.u32 %s1403_s29, 1  ;;  %s325_s11 = scalar_lea.vmem [#allocation7], %s1406_s18 }
  0x97   : > { %s331_s14 = scalar_lea.sflag [#allocation9], %s1403_s29  ;;  %s334_s16 = scalar_lea.vmem [#allocation8], %s787_s17 }
  0x98   : > { %1111 = dma.done.wait (%p1553_p3), %s331_s14, 32  }
  0x99   : > { %1113 = vsyncadd (%p1553_p3), %s331_s14, 4294967264  ;;  %v1150_v0 = vmov 0.0   ;;  %vm1151_vm0 = vmmov 0   ;;  %vm388_vm1 = vcmask 261120   ;;  %v385_v1 = vld [vmem:[%s316_s28] sm:$0xff]  ;;  %v383_v2 = vld [vmem:[%s307_s25] sm:$0xff] }
  0x9a   : > { %803 = vmatprep.subr.mxu0 %v1150_v0  ;;  %805 = vmatprep.mubr.msk.f32.mxu0 %vm1151_vm0, %v1150_v0  ;;  %v384_v3 = vmul.f32 0.17677669, %v383_v2  ;;  %v387_v4 = vld [vmem:[%s334_s16] sm:$0x3]  ;;  %v1152_v5 = vmov 0   ;;  %vm470_vm4 = vcmask 64512  }
  0x9b   : > { %808 = vmatprep.subr.mxu1 %v1150_v0  ;;  %810 = vmatprep.mubr.msk.f32.mxu1 %vm1151_vm0, %v1150_v0  ;;  %vm465_vm2 = vnez %v387_v4  ;;  %v386_v17 = vld [vmem:[%s325_s11] sm:$0xff]  ;;  %s380_s24 = scalar_lea.vmem [#allocation11], %s1406_s18  ;;  %s795_s30 = sshll.u32 %s1136_s21, 7 }
  0x9c   : > { %804 = vmatpush3.xpose.msk.msra.mxu0 %vm388_vm1, %v385_v1  ;;  %v466_v6 = vsel %vm465_vm2, 16843009, %v1152_v5  ;;  %809 = vmatpush3.msra.mxu1 %v386_v17  ;;  %s1442_s23 = scalar_lea.hbm %s1522_s5, %s795_s30  ;;  %s591_s1 = sshll.u32 %s380_s24, 4  ;;  %s592_s1 = int_to_ptr.vmem [resolvable:$true] %s591_s1 }
  0x9d   : > { %v467_v7 = vunpack.c.0.s8 %v466_v6  ;;  %s563_s10 = scalar_lea.sflag [#allocation12], %s1403_s29  ;;  %s1022_s9 = scalar_lea.vmem %s592_s1, 128 }
  0x9e   : > { %p1023_p6 = scmp.ne.s32.totalorder %s592_s1, %s1022_s9  ;;  %p1554_p8 = scmp.ne.s32.totalorder %s1540_s6, 0 }
  0x9f   : > { %806 = vmatmul.mubr.msk.f32.vlgmr.msra.gmra.mrb[0].mxu0 %vm388_vm1, %v384_v3  ;;  %vm468_vm3 = vcmp.ne.s32.totalorder %v467_v7, 0  ;;  %s1153_s8 = smov [#allocation11]  }
  0xa0   : > { %p1024_p9 = pnand %p1023_p6, %p1554_p8  ;;  %s1026_s13 = sshll.u32 %s1153_s8, 4  ;;  %s1027_s13 = int_to_ptr.vmem [resolvable:$false] %s1026_s13 }
  0xa1   : > { %s1028_s15 = scalar_lea.vmem %s1027_s13, 256  ;;  %p1029_p12 = scmp.lt.s32.totalorder %s592_s1, %s1027_s13 }
  0xa2   : > { %p1025_p10 = pneg %p1024_p9  ;;  %p1030_p5 = scmp.lt.s32.totalorder %s1028_s15, %s1022_s9 }
  0xa4   : > { %p1031_p11 = por %p1030_p5, %p1029_p12 }
  0xa6   : > { %p1032_p4 = pnand %p1031_p11, %p1025_p10 }
 0x172   : > { %v461_v8 = vpop.f32.mrb[0].mxu0 }
 0x173   : > { %v469_v9 = vsel %vm468_vm3, -1e+09, %v461_v8  ;;  %v807_v10 = vpop.f32.mrb[1].mxu0 }
 0x174   : > { %v471_v11 = vsel %vm470_vm4, %v469_v9, -inf }
 0x175   : > { %472 = vmax.xlane.f32.xlu0 %v471_v11 }
 0x202   : > { %v473_v12 = vpop.xlane.xlu0 %472 }
 0x203   : > { %v474_v13 = vsub.f32 %v469_v9, %v473_v12 }
 0x205   : > { %v475_v14 = vmul.f32 1.442695, %v474_v13 }
 0x207   : > { %898 = vpow2.f32 %v475_v14 }
 0x211   : > { %v899_v15 = vpop.eup %898 }
 0x212   : > { %v477_v16 = vsel %vm470_vm4, %v899_v15, 0.0 }
 0x213   : > { %478 = vadd.xlane.f32.xlu0 %v477_v16 }
 0x2a0   : > { %v479_v18 = vpop.xlane.xlu0 %478 }
 0x2a1   : > { %900 = vrcp.f32 %v479_v18 }
 0x2ab   : > { %v901_v19 = vpop.eup %900 }
 0x2ac   : > { %v481_v20 = vmul.f32 %v901_v19, %v899_v15 }
 0x2ae   : > { %811 = vmatmul.mubr.msk.f32.vlgmr.msra.gmra.mrb[0].mxu1 %vm470_vm4, %v481_v20  ;;  %555 = vst.msk [vmem:[%s380_s24] sm:$0xff] %vm470_vm4, %v481_v20 }
 0x2af   : > { %1035 = shalt.err (!%p1032_p4)
}
 0x2b0   : > { %s1036_s20 = scalar_lea.hbm %s1442_s23, 128  ;;  %s1040_s7 = scalar_lea.hbm %s1522_s5, 1024 }
 0x2b1   : > { %p1037_p13 = scmp.ne.s32.totalorder %s1442_s23, %s1036_s20  ;;  %p1041_p1 = scmp.lt.u32.totalorder %s1442_s23, %s1522_s5 }
 0x2b2   : > { %p1042_p7 = scmp.lt.u32.totalorder %s1040_s7, %s1036_s20  ;;  %p1044_p6 = scmp.lt.u32.totalorder %s1036_s20, %s1442_s23 }
 0x2b3   : > { %p1038_p2 = pnand %p1037_p13, %p1554_p8 }
 0x2b4   : > { %p1043_p3 = por %p1042_p7, %p1041_p1 }
 0x2b5   : > { %p1039_p0 = pneg %p1038_p2 }
 0x2b6   : > { %p1045_p9 = por %p1044_p6, %p1043_p3 }
 0x2b8   : > { %p1046_p10 = pnand %p1045_p9, %p1039_p0 }
 0x2ba   : > { %1049 = shalt.err (!%p1046_p10)
}
 0x2bb   : > { %822 = dma.vmem_to_hbm [thread:$0]  (%p1554_p8), %s592_s1, 128, %s1442_s23, %s563_s10  }
 0x2bc   : > { %s373_s11 = scalar_lea.vmem [#allocation10], %s1406_s18  ;;  %s1468_s27 = scalar_lea.hbm %s1521_s4, %s795_s30 }
 0x2bd   : > { %s577_s14 = sshll.u32 %s373_s11, 4  ;;  %s558_s26 = scalar_lea.sflag [#allocation4], %s1403_s29  ;;  %s1470_s14 = int_to_ptr.vmem [resolvable:$true] %s577_s14 }
 0x2be   : > { %s1050_s9 = scalar_lea.vmem %s1470_s14, 128  ;;  %s1154_s21 = smov [#allocation10]  }
 0x2bf   : > { %p1051_p12 = scmp.ne.s32.totalorder %s1470_s14, %s1050_s9  ;;  %s1054_s18 = sshll.u32 %s1154_s21, 4  ;;  %s1055_s18 = int_to_ptr.vmem [resolvable:$false] %s1054_s18 }
 0x2c0   : > { %s1056_s30 = scalar_lea.vmem %s1055_s18, 256  ;;  %p1057_p4 = scmp.lt.s32.totalorder %s1470_s14, %s1055_s18 }
 0x2c1   : > { %p1052_p5 = pnand %p1051_p12, %p1554_p8  ;;  %p1058_p13 = scmp.lt.s32.totalorder %s1056_s30, %s1050_s9 }
 0x2c3   : > { %p1053_p11 = pneg %p1052_p5  ;;  %p1059_p2 = por %p1058_p13, %p1057_p4 }
 0x2c5   : > { %p1060_p0 = pnand %p1059_p2, %p1053_p11 }
 0x381   : > { %v551_v21 = vpop.f32.mrb[0].mxu1 }
 0x382   : > { %556 = vst.msk [vmem:[%s373_s11] sm:$0xff] %vm388_vm1, %v551_v21  ;;  %v812_v22 = vpop.f32.mrb[1].mxu1 }
 0x383   : > { %1063 = shalt.err (!%p1060_p0)
}
 0x384   : > { %s1064_s29 = scalar_lea.hbm %s1468_s27, 128  ;;  %s1068_s10 = scalar_lea.hbm %s1521_s4, 1024 }
 0x385   : > { %p1065_p1 = scmp.ne.s32.totalorder %s1468_s27, %s1064_s29  ;;  %p1069_p6 = scmp.lt.u32.totalorder %s1468_s27, %s1521_s4 }
 0x386   : > { %p1070_p9 = scmp.lt.u32.totalorder %s1068_s10, %s1064_s29  ;;  %p1072_p12 = scmp.lt.u32.totalorder %s1064_s29, %s1468_s27 }
 0x387   : > { %p1066_p7 = pnand %p1065_p1, %p1554_p8 }
 0x388   : > { %p1071_p10 = por %p1070_p9, %p1069_p6 }
 0x389   : > { %p1067_p3 = pneg %p1066_p7 }
 0x38a   : > { %p1073_p5 = por %p1072_p12, %p1071_p10 }
 0x38c   : > { %p1074_p11 = pnand %p1073_p5, %p1067_p3 }
 0x38e   : > { %1077 = shalt.err (!%p1074_p11)
}
 0x38f   : > { %821 = dma.vmem_to_hbm [thread:$0]  (%p1554_p8), %s1470_s14, 128, %s1468_s27, %s558_s26  }
 0x390 PF: > { %s1555_s15 = sld [smem:[#allocation20_spill]]  ;;  %s1556_s20 = sld [smem:[#allocation18_spill]] }
 0x391   : > { %s1557_s25 = sld [smem:[#allocation23_spill]] }
 0x396   : > { %p846_p4 = scmp.ge.s32.totalorder %s1555_s15, 2  ;;  %s603_s12 = sand.u32 1, %s1556_s20  }
 0x397   : > { %p1558_p13 = scmp.ne.s32.totalorder %s1557_s25, 0  ;;  %s604_s7 = scalar_lea.sflag [#allocation4], %s603_s12 }
 0x399   : > { %p839_p2 = pnand %p846_p4, %p1558_p13 }
 0x39b   : > { %1115 = dma.done.wait (!%p839_p2), %s604_s7, 128  }
 0x39c   : > { %1117 = vsyncadd (!%p839_p2), %s604_s7, 4294967168  ;;  %s613_s28 = scalar_lea.sflag [#allocation12], %s603_s12 }
 0x39d   : > { %1119 = dma.done.wait (!%p839_p2), %s613_s28, 128  }
 0x39e   : > { %1121 = vsyncadd (!%p839_p2), %s613_s28, 4294967168  ;;  %s31_s23 = sadd.s32 1, %s1555_s15   ;;  %s1559_s6 = sld [smem:[#allocation19_spill]] }
 0x39f   : > { %p28_p0 = scmp.ge.s32.totalorder %s31_s23, 10   ;;  %s1560_s20 = sld [smem:[#allocation22_spill]] }
 0x3a0   : > { %s1561_s17 = sld [smem:[#allocation21_spill]]  ;;  %s1562_s18 = smov %s1128_s19 }
 0x3a1   : > { %s1564_s21 = smov %s1140_s22  ;;  %30 = sbr.rel (!%p28_p0) target bundleno = 14 (0xe), region = 135 }
 0x3a4   : > { %s1563_s19 = smov %s1559_s6 }
 0x3a6   : > { %s1565_s22 = smov %s1561_s17 }
 0x3a8   :  { %618 = vsyncpa [#allocation3], 1 }
 0x3a9   :  { %620 = vsyncpa [#allocation3 + $0x1], 1 }
 0x3aa   :  { %621 = vsyncpa [#allocation6], 1 }
 0x3ab   :  { %623 = vsyncpa [#allocation6 + $0x1], 1 }
 0x3ac   :  { %624 = vsyncpa [#allocation9], 1 }
 0x3ad   :  { %626 = vsyncpa [#allocation9 + $0x1], 1 }
 0x3ae   :  { %627 = vsyncpa [#allocation4], 1 }
 0x3af   :  { %629 = vsyncpa [#allocation4 + $0x1], 1 }
 0x3b0   :  { %630 = vsyncpa [#allocation12], 1 }
 0x3b1   :  { %632 = vsyncpa [#allocation12 + $0x1], 1 }

</bundles_post_ra>
